<compile_context>
chip_gen: v5e
topology: v5e:2x2
jax: 0.10.0
libtpu: 0.0.40
codegen_flags: <defaults>
</compile_context>

<pallas_src>
import functools

import jax
import jax.numpy as jnp
from jax.experimental import pallas as pl
from jax.experimental.pallas import tpu as pltpu


def _round_up(x, m):
    return ((x + m - 1) // m) * m


def mlp_kernel(alpha_ref, x_ref, w_in_ref, b_in_ref, w_hid_ref, b_hid_ref,
               w_out_ref, b_out_ref, out_ref):
    """One batch-tile of the fused MLP forward pass (weights resident in VMEM)."""
    a = alpha_ref[0]  # scalar PReLU slope, read once from SMEM

    def prelu(h):
        # PReLU(h) = h if h >= 0 else a * h
        return jnp.where(h >= 0, h, a * h)

    # Input layer + activation
    h = prelu(jnp.dot(x_ref[...], w_in_ref[...],
                      preferred_element_type=jnp.float32) + b_in_ref[...])

    # Hidden layers. n_hidden is small and static here, so a fully-unrolled
    # Python loop is the right choice.
    # TODO(synk): for deep/wide nets, switch to lax.fori_loop(..., unroll=True)
    # and stream w_hid per layer via an extra "arbitrary" grid axis (the full
    # stack will not stay resident under v7x's 64 MiB VMEM at scale).
    n_hidden = w_hid_ref.shape[0]
    for k in range(n_hidden):
        h = prelu(jnp.dot(h, w_hid_ref[k],
                          preferred_element_type=jnp.float32) + b_hid_ref[k])

    # Output layer (no activation), lane-dense (padded-to-128) store.
    out = jnp.dot(h, w_out_ref[...],
                  preferred_element_type=jnp.float32) + b_out_ref[...]
    out_ref[...] = out.astype(out_ref.dtype)


def _resident_spec(shape):
    """Full-array block, constant index_map (DMA'd once), single-buffered."""
    n = len(shape)
    return pl.BlockSpec(shape, lambda i: (0,) * n, pipeline_mode=pl.Buffered(1))


@functools.partial(jax.jit, static_argnames=("tile_batch",))
def net_forward(x, params, *, tile_batch=512):
    """Wrapper: batch-tiled fused Pallas MLP forward."""
    w_in, b_in, w_hid, b_hid, w_out, b_out, alpha = params
    batch, in_dim = x.shape
    neurons = w_in.shape[1]
    out_dim = w_out.shape[1]
    n_hidden = w_hid.shape[0]

    # ---- Lane-dense feature/output padding (multiples of 128 lanes). --------
    # Zero padding propagates exactly: PReLU(0 + 0) = 0, and zero activations
    # hit zero weight rows, so the sliced result is unchanged.
    n_pad = _round_up(neurons, 128)
    o_pad = _round_up(out_dim, 128)
    dn, do = n_pad - neurons, o_pad - out_dim
    w_in_p = jnp.pad(w_in, ((0, 0), (0, dn)))
    b_in_p = jnp.pad(b_in, ((0, 0), (0, dn)))
    w_hid_p = jnp.pad(w_hid, ((0, 0), (0, dn), (0, dn)))
    b_hid_p = jnp.pad(b_hid, ((0, 0), (0, 0), (0, dn)))
    w_out_p = jnp.pad(w_out, ((0, dn), (0, do)))
    b_out_p = jnp.pad(b_out, ((0, 0), (0, do)))

    # ---- Batch tile: big (>=256 fills v6e/v7x MXU rows), multiple of 8. -----
    # Small batches get a single tile; large batches tile at tile_batch (512),
    # which with power-of-two batches gives an even tile count for v7x's 2 TCs.
    tb = min(tile_batch, _round_up(batch, 8))
    padded = _round_up(batch, tb)
    if padded != batch:
        x = jnp.pad(x, ((0, padded - batch), (0, 0)))
    grid = (padded // tb,)

    flops = int(2 * padded * (in_dim * n_pad + n_hidden * n_pad * n_pad
                              + n_pad * o_pad))
    bytes_accessed = int(4 * (padded * in_dim + w_in_p.size + b_in_p.size
                              + w_hid_p.size + b_hid_p.size + w_out_p.size
                              + b_out_p.size + padded * o_pad))

    # Scoped-VMEM budget: resident (single-buffered) weights + double-buffered
    # activation tiles, 2x headroom; clamp to [32 MiB, 64 MiB] (<= physical on
    # every generation, >= what this toy config needs).
    weight_bytes = 4 * (w_in_p.size + b_in_p.size + w_hid_p.size + b_hid_p.size
                        + w_out_p.size + b_out_p.size)
    act_bytes = 4 * tb * (in_dim + n_pad + o_pad) * 2
    vmem_limit = int(min(64 << 20, max(32 << 20, 2 * (weight_bytes + act_bytes))))

    out = pl.pallas_call(
        mlp_kernel,
        out_shape=jax.ShapeDtypeStruct((padded, o_pad), jnp.float32),
        grid=grid,
        in_specs=[
            # PReLU slope: single scalar, keep it on the scalar path (SMEM).
            pl.BlockSpec(memory_space=pltpu.MemorySpace.SMEM),
            # Activations: tiled over the batch grid axis (double-buffered).
            pl.BlockSpec((tb, in_dim), lambda i: (i, 0)),
            # Weights / biases: resident across all batch tiles, single buffer.
            _resident_spec(w_in_p.shape),
            _resident_spec(b_in_p.shape),
            _resident_spec(w_hid_p.shape),
            _resident_spec(b_hid_p.shape),
            _resident_spec(w_out_p.shape),
            _resident_spec(b_out_p.shape),
        ],
        # Lane-dense output block (o_pad is a multiple of 128 -> unmasked vst).
        out_specs=pl.BlockSpec((tb, o_pad), lambda i: (i, 0)),
        compiler_params=pltpu.CompilerParams(
            dimension_semantics=("parallel",),
            vmem_limit_bytes=vmem_limit),
        cost_estimate=pl.CostEstimate(
            flops=flops, transcendentals=0, bytes_accessed=bytes_accessed),
    )(alpha, x, w_in_p, b_in_p, w_hid_p, b_hid_p, w_out_p, b_out_p)

    return out[:batch, :out_dim]


def init_params(key, input_dim, output_dim, n_hidden_layers, neurons):
    """Deterministic synthetic parameters (shapes match the nn.Linear layers)."""
    ks = jax.random.split(key, 6)
    scale = 0.1
    # weights stored as [in, out] (transposed vs. PyTorch's [out, in])
    w_in = scale * jax.random.normal(ks[0], (input_dim, neurons), jnp.float32)
    b_in = scale * jax.random.normal(ks[1], (1, neurons), jnp.float32)
    n_hidden = n_hidden_layers - 1
    w_hid = scale * jax.random.normal(ks[2], (n_hidden, neurons, neurons), jnp.float32)
    b_hid = scale * jax.random.normal(ks[3], (n_hidden, 1, neurons), jnp.float32)
    w_out = scale * jax.random.normal(ks[4], (neurons, output_dim), jnp.float32)
    b_out = scale * jax.random.normal(ks[5], (1, output_dim), jnp.float32)
    alpha = jnp.full((1,), 0.25, jnp.float32)   # PReLU default init (shared slope)
    return (w_in, b_in, w_hid, b_hid, w_out, b_out, alpha)


def net_forward_ref(x, params):
    """Pure-JAX reference for correctness checking."""
    w_in, b_in, w_hid, b_hid, w_out, b_out, alpha = params
    a = alpha[0]
    prelu = lambda h: jnp.where(h >= 0, h, a * h)
    h = prelu(x @ w_in + b_in)
    for k in range(w_hid.shape[0]):
        h = prelu(h @ w_hid[k] + b_hid[k])
    return h @ w_out + b_out


if __name__ == "__main__":
    # Small shapes consistent with the module's constructor.
    input_dim, output_dim = 4, 2
    n_hidden_layers, neurons = 3, 32
    batch = 8

    key = jax.random.PRNGKey(0)
    k_x, k_p = jax.random.split(key)
    x = jax.random.normal(k_x, (batch, input_dim), jnp.float32)
    params = init_params(k_p, input_dim, output_dim, n_hidden_layers, neurons)

    y = net_forward(x, params)
    jax.block_until_ready(y)

    y_ref = net_forward_ref(x, params)
    assert y.shape == (batch, output_dim)
    assert jnp.allclose(y, y_ref, atol=1e-5, rtol=1e-5), "mismatch vs reference"

    # Also exercise a batch that spans multiple grid tiles and needs row padding
    # (1549 -> padded 2048 -> grid of 4 x 512-row tiles).
    x_big = jax.random.normal(k_x, (1549, input_dim), jnp.float32)
    y_big = net_forward(x_big, params)
    jax.block_until_ready(y_big)
    assert y_big.shape == (1549, output_dim)
    assert jnp.allclose(y_big, net_forward_ref(x_big, params), atol=1e-5, rtol=1e-5)

    print("KERNEL_OK")
</pallas_src>

<mosaic_0001>
module attributes {stable_mosaic.version = 11 : i64} {
  func.func @mlp_kernel(%arg0: i32, %arg1: memref<1xf32, #tpu.memory_space<smem>>, %arg2: memref<8x4xf32, #tpu.memory_space<vmem>>, %arg3: memref<4x128xf32, #tpu.memory_space<vmem>>, %arg4: memref<1x128xf32, #tpu.memory_space<vmem>>, %arg5: memref<2x128x128xf32, #tpu.memory_space<vmem>>, %arg6: memref<2x1x128xf32, #tpu.memory_space<vmem>>, %arg7: memref<128x128xf32, #tpu.memory_space<vmem>>, %arg8: memref<1x128xf32, #tpu.memory_space<vmem>>, %arg9: memref<8x128xf32, #tpu.memory_space<vmem>>) attributes {dimension_semantics = [#tpu.dimension_semantics<parallel>], iteration_bounds = array<i64: 1>, scalar_prefetch = 0 : i64, scratch_operands = 0 : i64, tpu.core_type = #tpu.core_type<tc>, window_params = [{transform_indices = @transform_0, window_bounds = array<i64: 1>}, {transform_indices = @transform_1, window_bounds = array<i64: 8, 4>}, {pipeline_mode = #tpu.pipeline_mode<synchronous>, transform_indices = @transform_2, window_bounds = array<i64: 4, 128>}, {pipeline_mode = #tpu.pipeline_mode<synchronous>, transform_indices = @transform_3, window_bounds = array<i64: 1, 128>}, {pipeline_mode = #tpu.pipeline_mode<synchronous>, transform_indices = @transform_4, window_bounds = array<i64: 2, 128, 128>}, {pipeline_mode = #tpu.pipeline_mode<synchronous>, transform_indices = @transform_5, window_bounds = array<i64: 2, 1, 128>}, {pipeline_mode = #tpu.pipeline_mode<synchronous>, transform_indices = @transform_6, window_bounds = array<i64: 128, 128>}, {pipeline_mode = #tpu.pipeline_mode<synchronous>, transform_indices = @transform_7, window_bounds = array<i64: 1, 128>}, {transform_indices = @transform_8, window_bounds = array<i64: 8, 128>}]} {
    %c0 = arith.constant 0 : index
    %0 = memref.load %arg1[%c0] : memref<1xf32, #tpu.memory_space<smem>>
    %c0_0 = arith.constant 0 : index
    %c0_1 = arith.constant 0 : index
    %1 = vector.load %arg2[%c0_0, %c0_1] : memref<8x4xf32, #tpu.memory_space<vmem>>, vector<8x4xf32>
    %c0_2 = arith.constant 0 : index
    %c0_3 = arith.constant 0 : index
    %2 = vector.load %arg3[%c0_2, %c0_3] : memref<4x128xf32, #tpu.memory_space<vmem>>, vector<4x128xf32>
    %cst = arith.constant dense<0.000000e+00> : vector<8x128xf32>
    %3 = tpu.matmul %1, %2, %cst {dimension_numbers = #tpu.dot_dimension_numbers<[1], [0], [0], [1], [0, 0, 1, 1], [], []>} : vector<8x4xf32>, vector<4x128xf32>, vector<8x128xf32> -> vector<8x128xf32>
    %c0_4 = arith.constant 0 : index
    %c0_5 = arith.constant 0 : index
    %4 = vector.load %arg4[%c0_4, %c0_5] : memref<1x128xf32, #tpu.memory_space<vmem>>, vector<1x128xf32>
    %5 = vector.broadcast %4 : vector<1x128xf32> to vector<8x128xf32>
    %6 = arith.addf %3, %5 : vector<8x128xf32>
    %cst_6 = arith.constant 0.000000e+00 : f32
    %7 = vector.broadcast %cst_6 : f32 to vector<8x128xf32>
    %8 = arith.cmpf oge, %6, %7 : vector<8x128xf32>
    %9 = vector.broadcast %0 : f32 to vector<8x128xf32>
    %10 = arith.mulf %9, %6 : vector<8x128xf32>
    %11 = arith.select %8, %6, %10 : vector<8x128xi1>, vector<8x128xf32>
    %c0_7 = arith.constant 0 : index
    %c0_8 = arith.constant 0 : index
    %c0_9 = arith.constant 0 : index
    %12 = vector.load %arg5[%c0_7, %c0_8, %c0_9] : memref<2x128x128xf32, #tpu.memory_space<vmem>>, vector<1x128x128xf32>
    %13 = vector.shape_cast %12 : vector<1x128x128xf32> to vector<128x128xf32>
    %cst_10 = arith.constant dense<0.000000e+00> : vector<8x128xf32>
    %14 = tpu.matmul %11, %13, %cst_10 {dimension_numbers = #tpu.dot_dimension_numbers<[1], [0], [0], [1], [0, 0, 1, 1], [], []>} : vector<8x128xf32>, vector<128x128xf32>, vector<8x128xf32> -> vector<8x128xf32>
    %c0_11 = arith.constant 0 : index
    %c0_12 = arith.constant 0 : index
    %c0_13 = arith.constant 0 : index
    %15 = vector.load %arg6[%c0_11, %c0_12, %c0_13] : memref<2x1x128xf32, #tpu.memory_space<vmem>>, vector<1x1x128xf32>
    %16 = vector.shape_cast %15 : vector<1x1x128xf32> to vector<1x128xf32>
    %17 = vector.broadcast %16 : vector<1x128xf32> to vector<8x128xf32>
    %18 = arith.addf %14, %17 : vector<8x128xf32>
    %cst_14 = arith.constant 0.000000e+00 : f32
    %19 = vector.broadcast %cst_14 : f32 to vector<8x128xf32>
    %20 = arith.cmpf oge, %18, %19 : vector<8x128xf32>
    %21 = vector.broadcast %0 : f32 to vector<8x128xf32>
    %22 = arith.mulf %21, %18 : vector<8x128xf32>
    %23 = arith.select %20, %18, %22 : vector<8x128xi1>, vector<8x128xf32>
    %c1 = arith.constant 1 : index
    %c0_15 = arith.constant 0 : index
    %c0_16 = arith.constant 0 : index
    %24 = vector.load %arg5[%c1, %c0_15, %c0_16] : memref<2x128x128xf32, #tpu.memory_space<vmem>>, vector<1x128x128xf32>
    %25 = vector.shape_cast %24 : vector<1x128x128xf32> to vector<128x128xf32>
    %cst_17 = arith.constant dense<0.000000e+00> : vector<8x128xf32>
    %26 = tpu.matmul %23, %25, %cst_17 {dimension_numbers = #tpu.dot_dimension_numbers<[1], [0], [0], [1], [0, 0, 1, 1], [], []>} : vector<8x128xf32>, vector<128x128xf32>, vector<8x128xf32> -> vector<8x128xf32>
    %c1_18 = arith.constant 1 : index
    %c0_19 = arith.constant 0 : index
    %c0_20 = arith.constant 0 : index
    %27 = vector.load %arg6[%c1_18, %c0_19, %c0_20] : memref<2x1x128xf32, #tpu.memory_space<vmem>>, vector<1x1x128xf32>
    %28 = vector.shape_cast %27 : vector<1x1x128xf32> to vector<1x128xf32>
    %29 = vector.broadcast %28 : vector<1x128xf32> to vector<8x128xf32>
    %30 = arith.addf %26, %29 : vector<8x128xf32>
    %cst_21 = arith.constant 0.000000e+00 : f32
    %31 = vector.broadcast %cst_21 : f32 to vector<8x128xf32>
    %32 = arith.cmpf oge, %30, %31 : vector<8x128xf32>
    %33 = vector.broadcast %0 : f32 to vector<8x128xf32>
    %34 = arith.mulf %33, %30 : vector<8x128xf32>
    %35 = arith.select %32, %30, %34 : vector<8x128xi1>, vector<8x128xf32>
    %c0_22 = arith.constant 0 : index
    %c0_23 = arith.constant 0 : index
    %36 = vector.load %arg7[%c0_22, %c0_23] : memref<128x128xf32, #tpu.memory_space<vmem>>, vector<128x128xf32>
    %cst_24 = arith.constant dense<0.000000e+00> : vector<8x128xf32>
    %37 = tpu.matmul %35, %36, %cst_24 {dimension_numbers = #tpu.dot_dimension_numbers<[1], [0], [0], [1], [0, 0, 1, 1], [], []>} : vector<8x128xf32>, vector<128x128xf32>, vector<8x128xf32> -> vector<8x128xf32>
    %c0_25 = arith.constant 0 : index
    %c0_26 = arith.constant 0 : index
    %38 = vector.load %arg8[%c0_25, %c0_26] : memref<1x128xf32, #tpu.memory_space<vmem>>, vector<1x128xf32>
    %39 = vector.broadcast %38 : vector<1x128xf32> to vector<8x128xf32>
    %40 = arith.addf %37, %39 : vector<8x128xf32>
    %c0_27 = arith.constant 0 : index
    %c0_28 = arith.constant 0 : index
    %41 = vector.load %arg9[%c0_27, %c0_28] : memref<8x128xf32, #tpu.memory_space<vmem>>, vector<8x128xf32>
    tpu.vector_store %arg9[%c0_27, %c0_28], %40 {strides = array<i32>} : memref<8x128xf32, #tpu.memory_space<vmem>>, vector<8x128xf32>,
    return
  }
  func.func @transform_0(%arg0: i32) -> i32 {
    %c0_i32 = arith.constant 0 : i32
    %c0_i32_0 = arith.constant 0 : i32
    return %c0_i32 : i32
  }
  func.func @transform_1(%arg0: i32) -> (i32, i32) {
    %c0_i32 = arith.constant 0 : i32
    %c0_i32_0 = arith.constant 0 : i32
    return %arg0, %c0_i32 : i32, i32
  }
  func.func @transform_2(%arg0: i32) -> (i32, i32) {
    %c0_i32 = arith.constant 0 : i32
    %c0_i32_0 = arith.constant 0 : i32
    %c0_i32_1 = arith.constant 0 : i32
    return %c0_i32, %c0_i32_0 : i32, i32
  }
  func.func @transform_3(%arg0: i32) -> (i32, i32) {
    %c0_i32 = arith.constant 0 : i32
    %c0_i32_0 = arith.constant 0 : i32
    %c0_i32_1 = arith.constant 0 : i32
    return %c0_i32, %c0_i32_0 : i32, i32
  }
  func.func @transform_4(%arg0: i32) -> (i32, i32, i32) {
    %c0_i32 = arith.constant 0 : i32
    %c0_i32_0 = arith.constant 0 : i32
    %c0_i32_1 = arith.constant 0 : i32
    %c0_i32_2 = arith.constant 0 : i32
    return %c0_i32, %c0_i32_0, %c0_i32_1 : i32, i32, i32
  }
  func.func @transform_5(%arg0: i32) -> (i32, i32, i32) {
    %c0_i32 = arith.constant 0 : i32
    %c0_i32_0 = arith.constant 0 : i32
    %c0_i32_1 = arith.constant 0 : i32
    %c0_i32_2 = arith.constant 0 : i32
    return %c0_i32, %c0_i32_0, %c0_i32_1 : i32, i32, i32
  }
  func.func @transform_6(%arg0: i32) -> (i32, i32) {
    %c0_i32 = arith.constant 0 : i32
    %c0_i32_0 = arith.constant 0 : i32
    %c0_i32_1 = arith.constant 0 : i32
    return %c0_i32, %c0_i32_0 : i32, i32
  }
  func.func @transform_7(%arg0: i32) -> (i32, i32) {
    %c0_i32 = arith.constant 0 : i32
    %c0_i32_0 = arith.constant 0 : i32
    %c0_i32_1 = arith.constant 0 : i32
    return %c0_i32, %c0_i32_0 : i32, i32
  }
  func.func @transform_8(%arg0: i32) -> (i32, i32) {
    %c0_i32 = arith.constant 0 : i32
    %c0_i32_0 = arith.constant 0 : i32
    return %arg0, %c0_i32 : i32, i32
  }
}

</mosaic_0001>

<bundles_post_ra>
// kernel: net_forward.1
= control target key start
LH: loop header
LB: loop body
LE: loop exit
PB: predicated region body
PF: predicated region fallthrough
CT: control target
= control target key end

     0   :  { %vm41_vm0 = vcmask 1043456   ;;  %vm37_vm1 = vcmask 31744   ;;  %s438_s2 = inlined_call_operand.vmem [shape: f32[4,128], index: 2, kind: input, shape index: {}]   ;;  %s439_s1 = inlined_call_operand.vmem [shape: f32[8,4], index: 1, kind: input, shape index: {}]   ;;  %s440_s4 = inlined_call_operand.vmem [shape: f32[2,128,128], index: 4, kind: input, shape index: {}]   ;;  %s441_s3 = inlined_call_operand.vmem [shape: f32[1,128], index: 3, kind: input, shape index: {}]   ;;  %s442_s5 = inlined_call_operand.vmem [shape: f32[2,1,128], index: 5, kind: input, shape index: {}]   ;;  %s443_s0 = inlined_call_operand.<no memory space> [shape: f32[1], index: 0, kind: input, shape index: {}]   ;;  %s444_s6 = inlined_call_operand.vmem [shape: f32[128,128], index: 6, kind: input, shape index: {}]   ;;  %s445_s7 = inlined_call_operand.vmem [shape: f32[1,128], index: 7, kind: input, shape index: {}]   ;;  %s446_s8 = inlined_call_operand.vmem [shape: f32[8,128], index: 8, kind: output, shape index: {}]  }
   0x1   :  { %v32_v0 = vld [vmem:[%s438_s2] sm:$0xf]  ;;  %v84_v2 = vld [vmem:[%s440_s4 + $0x78] sm:$0xff]  ;;  %v83_v3 = vld [vmem:[%s440_s4 + $0x70] sm:$0xff]  ;;  %v66_v33 = vstv %s443_s0 }
   0x2   :  { %v31_v1 = vld [vmem:[%s439_s1] sm:$0xff]  ;;  %202 = vmatpush.msk.msra.mxu0 %vm41_vm0, %v32_v0  ;;  %89 = vmatpush.msra.mxu1 %v84_v2  ;;  %v82_v4 = vld [vmem:[%s440_s4 + $0x68] sm:$0xff]  ;;  %v80_v6 = vld [vmem:[%s440_s4 + $0x58] sm:$0xff] }
   0x3   :  { %203 = vmatmul.msk.f32.vlgmr.msra.gmra.mxu0 %vm37_vm1, %v31_v1  ;;  %v81_v5 = vld [vmem:[%s440_s4 + $0x60] sm:$0xff]  ;;  %v79_v7 = vld [vmem:[%s440_s4 + $0x50] sm:$0xff]  ;;  %v78_v8 = vld [vmem:[%s440_s4 + $0x48] sm:$0xff] }
   0x4   :  { %90 = vmatpush.msra.mxu1 %v83_v3  ;;  %v77_v9 = vld [vmem:[%s440_s4 + $0x40] sm:$0xff]  ;;  %v76_v10 = vld [vmem:[%s440_s4 + $0x38] sm:$0xff]  ;;  %v75_v11 = vld [vmem:[%s440_s4 + $0x30] sm:$0xff] }
   0x5   :  { %v74_v12 = vld [vmem:[%s440_s4 + $0x28] sm:$0xff]  ;;  %v73_v13 = vld [vmem:[%s440_s4 + $0x20] sm:$0xff]  ;;  %v72_v14 = vld [vmem:[%s440_s4 + $0x18] sm:$0xff] }
   0x6   :  { %91 = vmatpush.msra.mxu1 %v82_v4  ;;  %v71_v15 = vld [vmem:[%s440_s4 + $0x10] sm:$0xff]  ;;  %v70_v16 = vld [vmem:[%s440_s4 + $0x8] sm:$0xff]  ;;  %v69_v17 = vld [vmem:[%s440_s4] sm:$0xff] }
   0x7   :  { %v219_v18 = vld [vmem:[%s440_s4 + $0xf8] sm:$0xff]  ;;  %v218_v19 = vld [vmem:[%s440_s4 + $0xf0] sm:$0xff]  ;;  %v217_v20 = vld [vmem:[%s440_s4 + $0xe8] sm:$0xff] }
   0x8   :  { %92 = vmatpush.msra.mxu1 %v81_v5  ;;  %134 = vmatpush.msra.mxu2 %v219_v18  ;;  %v216_v21 = vld [vmem:[%s440_s4 + $0xe0] sm:$0xff]  ;;  %v215_v22 = vld [vmem:[%s440_s4 + $0xd8] sm:$0xff]  ;;  %v214_v23 = vld [vmem:[%s440_s4 + $0xd0] sm:$0xff] }
   0x9   :  { %v213_v24 = vld [vmem:[%s440_s4 + $0xc8] sm:$0xff]  ;;  %v212_v25 = vld [vmem:[%s440_s4 + $0xc0] sm:$0xff]  ;;  %v211_v26 = vld [vmem:[%s440_s4 + $0xb8] sm:$0xff] }
   0xa   :  { %93 = vmatpush.msra.mxu1 %v80_v6  ;;  %135 = vmatpush.msra.mxu2 %v218_v19  ;;  %v210_v27 = vld [vmem:[%s440_s4 + $0xb0] sm:$0xff]  ;;  %v209_v28 = vld [vmem:[%s440_s4 + $0xa8] sm:$0xff]  ;;  %v208_v29 = vld [vmem:[%s440_s4 + $0xa0] sm:$0xff] }
   0xb   :  { %v207_v30 = vld [vmem:[%s440_s4 + $0x98] sm:$0xff]  ;;  %v221_v31 = vld [vmem:[%s441_s3] ss:$0 sm:$0xff]  ;;  %v206_v37 = vld [vmem:[%s440_s4 + $0x90] sm:$0xff] }
   0xc   :  { %94 = vmatpush.msra.mxu1 %v79_v7  ;;  %136 = vmatpush.msra.mxu2 %v217_v20  ;;  %v205_v38 = vld [vmem:[%s440_s4 + $0x88] sm:$0xff]  ;;  %v204_v39 = vld [vmem:[%s440_s4 + $0x80] sm:$0xff]  ;;  %v172_v40 = vld [vmem:[%s444_s6 + $0x78] sm:$0xff] }
   0xd   :  { %v171_v41 = vld [vmem:[%s444_s6 + $0x70] sm:$0xff]  ;;  %177 = vmatpush.msra.mxu3 %v172_v40  ;;  %v170_v42 = vld [vmem:[%s444_s6 + $0x68] sm:$0xff]  ;;  %v169_v43 = vld [vmem:[%s444_s6 + $0x60] sm:$0xff] }
   0xe   :  { %95 = vmatpush.msra.mxu1 %v78_v8  ;;  %137 = vmatpush.msra.mxu2 %v216_v21  ;;  %v168_v44 = vld [vmem:[%s444_s6 + $0x58] sm:$0xff]  ;;  %v167_v45 = vld [vmem:[%s444_s6 + $0x50] sm:$0xff]  ;;  %v166_v46 = vld [vmem:[%s444_s6 + $0x48] sm:$0xff] }
   0xf   :  { %178 = vmatpush.msra.mxu3 %v171_v41  ;;  %v165_v47 = vld [vmem:[%s444_s6 + $0x40] sm:$0xff]  ;;  %v164_v48 = vld [vmem:[%s444_s6 + $0x38] sm:$0xff]  ;;  %v163_v49 = vld [vmem:[%s444_s6 + $0x30] sm:$0xff] }
  0x10   :  { %96 = vmatpush.msra.mxu1 %v77_v9  ;;  %138 = vmatpush.msra.mxu2 %v215_v22  ;;  %v162_v50 = vld [vmem:[%s444_s6 + $0x28] sm:$0xff]  ;;  %v161_v51 = vld [vmem:[%s444_s6 + $0x20] sm:$0xff]  ;;  %v160_v52 = vld [vmem:[%s444_s6 + $0x18] sm:$0xff] }
  0x11   :  { %179 = vmatpush.msra.mxu3 %v170_v42  ;;  %v222_v53 = vld [vmem:[%s442_s5] ss:$0 sm:$0xff]  ;;  %v159_v58 = vld [vmem:[%s444_s6 + $0x10] sm:$0xff]  ;;  %v158_v59 = vld [vmem:[%s444_s6 + $0x8] sm:$0xff] }
  0x12   :  { %97 = vmatpush.msra.mxu1 %v76_v10  ;;  %139 = vmatpush.msra.mxu2 %v214_v23  ;;  %v157_v60 = vld [vmem:[%s444_s6] sm:$0xff] }
  0x13   :  { %180 = vmatpush.msra.mxu3 %v169_v43  ;;  %v223_v61 = vld [vmem:[%s442_s5 + $0x1] ss:$0 sm:$0xff]  ;;  %v224_v2 = vld [vmem:[%s445_s7] ss:$0 sm:$0xff] }
  0x14   :  { %98 = vmatpush.msra.mxu1 %v75_v11  ;;  %140 = vmatpush.msra.mxu2 %v213_v24 }
  0x15   :  { %181 = vmatpush.msra.mxu3 %v168_v44 }
  0x16   :  { %99 = vmatpush.msra.mxu1 %v74_v12  ;;  %141 = vmatpush.msra.mxu2 %v212_v25 }
  0x17   :  { %182 = vmatpush.msra.mxu3 %v167_v45 }
  0x18   :  { %100 = vmatpush.msra.mxu1 %v73_v13  ;;  %142 = vmatpush.msra.mxu2 %v211_v26 }
  0x19   :  { %183 = vmatpush.msra.mxu3 %v166_v46 }
  0x1a   :  { %101 = vmatpush.msra.mxu1 %v72_v14  ;;  %143 = vmatpush.msra.mxu2 %v210_v27 }
  0x1b   :  { %184 = vmatpush.msra.mxu3 %v165_v47 }
  0x1c   :  { %102 = vmatpush.msra.mxu1 %v71_v15  ;;  %144 = vmatpush.msra.mxu2 %v209_v28 }
  0x1d   :  { %185 = vmatpush.msra.mxu3 %v164_v48 }
  0x1e   :  { %103 = vmatpush.msra.mxu1 %v70_v16  ;;  %145 = vmatpush.msra.mxu2 %v208_v29 }
  0x1f   :  { %186 = vmatpush.msra.mxu3 %v163_v49 }
  0x20   :  { %104 = vmatpush.msra.mxu1 %v69_v17  ;;  %146 = vmatpush.msra.mxu2 %v207_v30 }
  0x21   :  { %187 = vmatpush.msra.mxu3 %v162_v50 }
  0x22   :  { %147 = vmatpush.msra.mxu2 %v206_v37 }
  0x23   :  { %188 = vmatpush.msra.mxu3 %v161_v51 }
  0x24   :  { %148 = vmatpush.msra.mxu2 %v205_v38 }
  0x25   :  { %189 = vmatpush.msra.mxu3 %v160_v52 }
  0x26   :  { %149 = vmatpush.msra.mxu2 %v204_v39 }
  0x27   :  { %190 = vmatpush.msra.mxu3 %v159_v58 }
  0x29   :  { %191 = vmatpush.msra.mxu3 %v158_v59 }
  0x2b   :  { %192 = vmatpush.msra.mxu3 %v157_v60 }
  0x80   :  { %v62_v32 = vpop.f32.mrf.mxu0 }
  0x81   :  { %v63_v34 = vadd.f32 %v221_v31, %v62_v32 }
  0x83   :  { %vm65_vm2 = vcmp.ge.f32.partialorder %v63_v34, 0.0  ;;  %v67_v35 = vmul.f32 %v66_v33, %v63_v34 }
  0x85   :  { %v68_v36 = vsel %vm65_vm2, %v63_v34, %v67_v35 }
  0x86   :  { %105 = vmatmul.f32.vlgmr.msra.gmra.mxu1 %v68_v36 }
 0x103   :  { %v106_v54 = vpop.f32.mrf.mxu1 }
 0x104   :  { %v107_v55 = vadd.f32 %v222_v53, %v106_v54 }
 0x106   :  { %vm109_vm3 = vcmp.ge.f32.partialorder %v107_v55, 0.0  ;;  %v110_v56 = vmul.f32 %v107_v55, %v66_v33 }
 0x108   :  { %v111_v57 = vsel %vm109_vm3, %v107_v55, %v110_v56 }
 0x109   :  { %150 = vmatmul.f32.vlgmr.msra.gmra.mxu2 %v111_v57 }
 0x18c   :  { %v151_v62 = vpop.f32.mrf.mxu2 }
 0x18d   :  { %v152_v63 = vadd.f32 %v223_v61, %v151_v62 }
 0x18f   :  { %vm154_vm4 = vcmp.ge.f32.partialorder %v152_v63, 0.0  ;;  %v155_v0 = vmul.f32 %v152_v63, %v66_v33 }
 0x191   :  { %v156_v1 = vsel %vm154_vm4, %v152_v63, %v155_v0 }
 0x192   :  { %193 = vmatmul.f32.vlgmr.msra.gmra.mxu3 %v156_v1 }
 0x215   :  { %v194_v3 = vpop.f32.mrf.mxu3 }
 0x216   :  { %v195_v4 = vadd.f32 %v224_v2, %v194_v3 }
 0x218   :  { %197 = vst [vmem:[%s446_s8] sm:$0xff] %v195_v4 }

</bundles_post_ra>
